<compile_context>
chip_gen: v6e
topology: v6e:2x2x1
jax: 0.10.0
libtpu: 0.0.40
codegen_flags: <defaults>
</compile_context>

<pallas_src>
import functools

import jax
import jax.numpy as jnp
from jax.experimental import pallas as pl
from jax.experimental.pallas import tpu as pltpu

_BIG_NORM = 1e30  # sentinel ||d||^2 for padded codebook rows (never selected)


def _round_up(v, m):
    return ((v + m - 1) // m) * m


def _quantize_tile(x, d, dnorm, num_valid, use_mxu):
    """Quantize one (C, THW) tile against the (K_pad, C) codebook.

    Returns (emb (C, THW) float32, idx (1, THW) int32).
    """
    C, thw = x.shape
    kp = d.shape[0]
    xf = x.astype(jnp.float32)
    df = d.astype(jnp.float32)

    if use_mxu:
        # Large codebook / channel count: the MXU is worth the FIFO round trip.
        dots = jnp.dot(df, xf, preferred_element_type=jnp.float32)    # (kp, thw)
    else:
        # Tiny contraction dim: VPU broadcast-FMA, keep the MXU slot free.
        dots = df[:, 0:1] * xf[0:1, :]
        for c in range(1, C):
            dots = dots + df[:, c:c + 1] * xf[c:c + 1, :]

    # ||x||^2 is constant along the codebook axis -> irrelevant for argmin.
    score = dnorm - 2.0 * dots                                        # (kp, thw)

    # First-occurrence argmin along the (sublane) codebook axis.  Exact
    # equality with the min is safe: the min is one of the compared values,
    # and padded rows carry a huge sentinel norm so they never match.
    min_s = jnp.min(score, axis=0, keepdims=True)                     # (1, thw)
    iota_k = jax.lax.broadcasted_iota(jnp.int32, (kp, thw), 0)
    idx = jnp.min(jnp.where(score == min_s, iota_k, kp),
                  axis=0, keepdims=True)                              # (1, thw)
    # Keep idx in-range even for pathological (NaN) inputs.
    idx = jnp.minimum(idx, num_valid - 1)

    # Embedding gather as one-hot * codebook-column, reduced over sublanes
    # (exact; matches dictionary[idx]).
    onehot = (iota_k == idx).astype(jnp.float32)                      # (kp, thw)
    if use_mxu:
        emb = jax.lax.dot_general(df, onehot, (((0,), (0,)), ((), ())),
                                  preferred_element_type=jnp.float32)  # (C, thw)
    else:
        rows = [jnp.sum(onehot * df[:, c:c + 1], axis=0, keepdims=True)
                for c in range(C)]
        emb = jnp.concatenate(rows, axis=0)                           # (C, thw)
    return emb, idx.astype(jnp.int32)


def _vq_kernel(xr_ref, xt_ref, dict_ref, dnorm_ref,
               embr_ref, idxr_ref, embt_ref, idxt_ref,
               *, num_valid, use_mxu):
    d = dict_ref[...]                       # (K_pad, C) — constant block, fetched once
    dnorm = dnorm_ref[...]                  # (K_pad, 1)

    emb_r, idx_r = _quantize_tile(xr_ref[...], d, dnorm, num_valid, use_mxu)
    embr_ref[...] = emb_r.astype(embr_ref.dtype)
    idxr_ref[...] = idx_r

    emb_t, idx_t = _quantize_tile(xt_ref[...], d, dnorm, num_valid, use_mxu)
    embt_ref[...] = emb_t.astype(embt_ref.dtype)
    idxt_ref[...] = idx_t


def vq_lookup_pair(dictionary, x_rgb, x_th, *, vmem_budget_bytes=4 << 20):
    """Nearest-codebook lookup for both modalities (NCHW-native, HW in lanes).

    x_rgb / x_th: (N, C, HW), dictionary: (K, C).
    Returns (emb_rgb, idx_rgb, emb_th, idx_th) with the HW axis padded up to a
    multiple of the lane tile (callers slice back to HW).
    """
    N, C, HW = x_rgb.shape
    K, Cd = dictionary.shape
    assert Cd == C and x_th.shape == x_rgb.shape

    # Codebook padded only to sublane granularity (K on sublanes now); the
    # sentinel ||d||^2 keeps padded rows from ever winning the argmin.
    k_pad = max(8, _round_up(K, 8))
    dict_p = jnp.pad(dictionary, ((0, k_pad - K), (0, 0)))
    d_norm = jnp.sum(dictionary.astype(jnp.float32) ** 2, axis=-1)
    d_norm = jnp.pad(d_norm, (0, k_pad - K), constant_values=_BIG_NORM)
    d_norm = d_norm.reshape(k_pad, 1)

    # Lane-tile (THW) selection under an explicit VMEM budget (sized for v7x's
    # 64 MiB physical / 32 MiB default scoped VMEM; trivially fits v5e/v6e).
    itemsize = x_rgb.dtype.itemsize
    per_lane = 2 * 2 * (2 * C * itemsize + 4)     # double-buffered x/emb/idx tiles, 2 modalities
    per_lane += 2 * 5 * k_pad * 4                 # f32/i32 intermediates per modality
    thw_cap = max(128, (vmem_budget_bytes // per_lane) // 128 * 128)

    hw_pad = _round_up(HW, 128)
    n_hw = pl.cdiv(hw_pad, thw_cap)
    thw = _round_up(pl.cdiv(hw_pad, n_hw), 128)
    hw_pad = n_hw * thw
    if hw_pad != HW:
        pad = ((0, 0), (0, 0), (0, hw_pad - HW))
        x_rgb = jnp.pad(x_rgb, pad)
        x_th = jnp.pad(x_th, pad)

    use_mxu = (C >= 64 and k_pad >= 256)
    kernel = functools.partial(_vq_kernel, num_valid=K, use_mxu=use_mxu)

    x_spec = pl.BlockSpec((None, C, thw), lambda n, t: (n, 0, t))
    idx_spec = pl.BlockSpec((None, 1, thw), lambda n, t: (n, 0, t))

    emb_rgb, idx_rgb, emb_th, idx_th = pl.pallas_call(
        kernel,
        out_shape=(jax.ShapeDtypeStruct((N, C, hw_pad), x_rgb.dtype),
                   jax.ShapeDtypeStruct((N, 1, hw_pad), jnp.int32),
                   jax.ShapeDtypeStruct((N, C, hw_pad), x_th.dtype),
                   jax.ShapeDtypeStruct((N, 1, hw_pad), jnp.int32)),
        grid_spec=pltpu.PrefetchScalarGridSpec(
            num_scalar_prefetch=0,
            grid=(N, n_hw),
            in_specs=[x_spec, x_spec,
                      pl.BlockSpec((k_pad, C), lambda n, t: (0, 0)),
                      pl.BlockSpec((k_pad, 1), lambda n, t: (0, 0))],
            out_specs=(x_spec, idx_spec, x_spec, idx_spec)),
        compiler_params=pltpu.CompilerParams(
            dimension_semantics=("parallel", "parallel"),
            vmem_limit_bytes=32 * 1024 * 1024),
    )(x_rgb, x_th, dict_p, d_norm)
    return emb_rgb, idx_rgb, emb_th, idx_th


@jax.jit
def _vq_forward(dictionary, enc_rgb, enc_th):
    """Quantize both modalities against the shared codebook in one kernel."""
    N, C, H, W = enc_rgb.shape
    HW = H * W

    emb_r, idx_r, emb_t, idx_t = vq_lookup_pair(
        dictionary, enc_rgb.reshape(N, C, HW), enc_th.reshape(N, C, HW))

    def finish(emb_flat, idx_flat, inputs):
        embedded = emb_flat[:, :, :HW].reshape(N, C, H, W)
        idxs = idx_flat[:, 0, :HW].reshape(N, H, W)
        # Straight-through estimator (forward value == embedded).
        embedded_pt = (jax.lax.stop_gradient(embedded)
                       + inputs - jax.lax.stop_gradient(inputs))
        return embedded_pt, embedded, idxs

    return finish(emb_r, idx_r, enc_rgb), finish(emb_t, idx_t, enc_th)


class VQ:
    """Vector-quantization layer with a shared codebook for both modalities."""

    def __init__(self, num_channels, num_latents, key):
        self.num_channels = num_channels
        self.num_latents = num_latents
        # nn.Parameter(torch.randn(num_latents, num_channels)) equivalent
        self.dictionary = jax.random.normal(
            key, (num_latents, num_channels), dtype=jnp.float32)

    def __call__(self, encoded_x_rgb, encoded_x_thermal):
        assert encoded_x_rgb.shape[1] == self.num_channels
        assert encoded_x_thermal.shape[1] == self.num_channels
        return _vq_forward(self.dictionary, encoded_x_rgb, encoded_x_thermal)


class Encoder:
    """Abstract VQ-VAE encoder: encode() then VQ-quantize both modalities."""

    def __init__(self, num_channels, num_latents, key):
        self.vq = VQ(num_channels, num_latents, key)

    def encode(self, x, x_thermal):
        # TODO(synk): encode() is abstract in the reference (subclasses add
        # conv stacks); here inputs are treated as already encoded to
        # num_channels channels.
        return x, x_thermal

    def __call__(self, x, x_thermal):
        encoded_x_rgb, encoded_x_thermal = self.encode(x, x_thermal)
        return self.vq(encoded_x_rgb, encoded_x_thermal)


def _reference_quantize(x_nchw, dictionary):
    """Pure-JAX reference of the VQ forward for correctness checking."""
    N, C, H, W = x_nchw.shape
    x = jnp.transpose(x_nchw, (0, 2, 3, 1)).reshape(-1, C)
    dists = (jnp.sum(x * x, -1, keepdims=True)
             + jnp.sum(dictionary * dictionary, -1)[None, :]
             - 2.0 * x @ dictionary.T)
    idx = jnp.argmin(dists, axis=-1)
    emb = dictionary[idx]
    embedded = jnp.transpose(emb.reshape(N, H, W, C), (0, 3, 1, 2))
    return embedded, idx.reshape(N, H, W)


if __name__ == "__main__":
    key = jax.random.PRNGKey(0)
    k_dict, k_rgb, k_thermal = jax.random.split(key, 3)

    num_channels = 4   # latent codebook channel dim
    num_latents = 8    # codebook entries
    N, H, W = 2, 16, 16

    x_rgb = jax.random.normal(k_rgb, (N, num_channels, H, W), dtype=jnp.float32)
    x_thermal = jax.random.normal(k_thermal, (N, num_channels, H, W),
                                  dtype=jnp.float32)

    enc = Encoder(num_channels, num_latents, k_dict)
    rgb_out, thermal_out = enc(x_rgb, x_thermal)
    emb_pt_rgb, emb_rgb, idx_rgb = rgb_out
    emb_pt_th, emb_th, idx_th = thermal_out
    jax.block_until_ready((emb_pt_rgb, emb_rgb, idx_rgb,
                           emb_pt_th, emb_th, idx_th))

    # Correctness check vs pure-JAX reference
    ref_emb_rgb, ref_idx_rgb = _reference_quantize(x_rgb, enc.vq.dictionary)
    ref_emb_th, ref_idx_th = _reference_quantize(x_thermal, enc.vq.dictionary)
    assert jnp.allclose(emb_rgb, ref_emb_rgb, atol=1e-5)
    assert jnp.allclose(emb_th, ref_emb_th, atol=1e-5)
    assert jnp.array_equal(idx_rgb, ref_idx_rgb)
    assert jnp.array_equal(idx_th, ref_idx_th)
    assert jnp.allclose(emb_pt_rgb, emb_rgb, atol=1e-5)  # STE forward value
    assert jnp.allclose(emb_pt_th, emb_th, atol=1e-5)

    print("KERNEL_OK")
</pallas_src>

<mosaic_0001>
module attributes {stable_mosaic.version = 11 : i64} {
  func.func @_vq_kernel(%arg0: i32, %arg1: i32, %arg2: memref<1x4x256xf32, #tpu.memory_space<vmem>>, %arg3: memref<1x4x256xf32, #tpu.memory_space<vmem>>, %arg4: memref<8x4xf32, #tpu.memory_space<vmem>>, %arg5: memref<8x1xf32, #tpu.memory_space<vmem>>, %arg6: memref<1x4x256xf32, #tpu.memory_space<vmem>>, %arg7: memref<1x1x256xi32, #tpu.memory_space<vmem>>, %arg8: memref<1x4x256xf32, #tpu.memory_space<vmem>>, %arg9: memref<1x1x256xi32, #tpu.memory_space<vmem>>) attributes {dimension_semantics = [#tpu.dimension_semantics<parallel>, #tpu.dimension_semantics<parallel>], iteration_bounds = array<i64: 2, 1>, scalar_prefetch = 0 : i64, scratch_operands = 0 : i64, tpu.core_type = #tpu.core_type<tc>, window_params = [{transform_indices = @transform_0, window_bounds = array<i64: 1, 4, 256>}, {transform_indices = @transform_1, window_bounds = array<i64: 1, 4, 256>}, {pipeline_mode = #tpu.pipeline_mode<synchronous>, transform_indices = @transform_2, window_bounds = array<i64: 8, 4>}, {pipeline_mode = #tpu.pipeline_mode<synchronous>, transform_indices = @transform_3, window_bounds = array<i64: 8, 1>}, {transform_indices = @transform_4, window_bounds = array<i64: 1, 4, 256>}, {transform_indices = @transform_5, window_bounds = array<i64: 1, 1, 256>}, {transform_indices = @transform_6, window_bounds = array<i64: 1, 4, 256>}, {transform_indices = @transform_7, window_bounds = array<i64: 1, 1, 256>}]} {
    %c0 = arith.constant 0 : index
    %c0_0 = arith.constant 0 : index
    %0 = vector.load %arg4[%c0, %c0_0] : memref<8x4xf32, #tpu.memory_space<vmem>>, vector<8x4xf32>
    %c0_1 = arith.constant 0 : index
    %c0_2 = arith.constant 0 : index
    %1 = vector.load %arg5[%c0_1, %c0_2] : memref<8x1xf32, #tpu.memory_space<vmem>>, vector<8x1xf32>
    %c0_3 = arith.constant 0 : index
    %c0_4 = arith.constant 0 : index
    %c0_5 = arith.constant 0 : index
    %2 = vector.load %arg2[%c0_3, %c0_4, %c0_5] : memref<1x4x256xf32, #tpu.memory_space<vmem>>, vector<1x4x256xf32>
    %3 = vector.shape_cast %2 : vector<1x4x256xf32> to vector<4x256xf32>
    %4 = vector.extract_strided_slice %0 {offsets = [0, 0], sizes = [8, 1], strides = [1, 1]} : vector<8x4xf32> to vector<8x1xf32>
    %5 = vector.extract_strided_slice %3 {offsets = [0, 0], sizes = [1, 256], strides = [1, 1]} : vector<4x256xf32> to vector<1x256xf32>
    %6 = vector.broadcast %4 : vector<8x1xf32> to vector<8x256xf32>
    %7 = vector.broadcast %5 : vector<1x256xf32> to vector<8x256xf32>
    %8 = arith.mulf %6, %7 : vector<8x256xf32>
    %9 = vector.extract_strided_slice %0 {offsets = [0, 1], sizes = [8, 1], strides = [1, 1]} : vector<8x4xf32> to vector<8x1xf32>
    %10 = vector.extract_strided_slice %3 {offsets = [1, 0], sizes = [1, 256], strides = [1, 1]} : vector<4x256xf32> to vector<1x256xf32>
    %11 = vector.broadcast %9 : vector<8x1xf32> to vector<8x256xf32>
    %12 = vector.broadcast %10 : vector<1x256xf32> to vector<8x256xf32>
    %13 = arith.mulf %11, %12 : vector<8x256xf32>
    %14 = arith.addf %8, %13 : vector<8x256xf32>
    %15 = vector.extract_strided_slice %0 {offsets = [0, 2], sizes = [8, 1], strides = [1, 1]} : vector<8x4xf32> to vector<8x1xf32>
    %16 = vector.extract_strided_slice %3 {offsets = [2, 0], sizes = [1, 256], strides = [1, 1]} : vector<4x256xf32> to vector<1x256xf32>
    %17 = vector.broadcast %15 : vector<8x1xf32> to vector<8x256xf32>
    %18 = vector.broadcast %16 : vector<1x256xf32> to vector<8x256xf32>
    %19 = arith.mulf %17, %18 : vector<8x256xf32>
    %20 = arith.addf %14, %19 : vector<8x256xf32>
    %21 = vector.extract_strided_slice %0 {offsets = [0, 3], sizes = [8, 1], strides = [1, 1]} : vector<8x4xf32> to vector<8x1xf32>
    %22 = vector.extract_strided_slice %3 {offsets = [3, 0], sizes = [1, 256], strides = [1, 1]} : vector<4x256xf32> to vector<1x256xf32>
    %23 = vector.broadcast %21 : vector<8x1xf32> to vector<8x256xf32>
    %24 = vector.broadcast %22 : vector<1x256xf32> to vector<8x256xf32>
    %25 = arith.mulf %23, %24 : vector<8x256xf32>
    %26 = arith.addf %20, %25 : vector<8x256xf32>
    %cst = arith.constant 2.000000e+00 : f32
    %27 = vector.broadcast %cst : f32 to vector<8x256xf32>
    %28 = arith.mulf %27, %26 : vector<8x256xf32>
    %29 = vector.broadcast %1 : vector<8x1xf32> to vector<8x256xf32>
    %30 = arith.subf %29, %28 : vector<8x256xf32>
    %cst_6 = arith.constant dense<0x7F800000> : vector<256xf32>
    %31 = vector.multi_reduction <minimumf>, %30, %cst_6 [0] : vector<8x256xf32> to vector<256xf32>
    %32 = vector.shape_cast %31 : vector<256xf32> to vector<1x256xf32>
    %33 = tpu.iota {dimensions = array<i32: 0>} : vector<8x256xi32>
    %34 = vector.broadcast %32 : vector<1x256xf32> to vector<8x256xf32>
    %35 = arith.cmpf oeq, %30, %34 : vector<8x256xf32>
    %c8_i32 = arith.constant 8 : i32
    %36 = vector.broadcast %c8_i32 : i32 to vector<8x256xi32>
    %37 = arith.select %35, %33, %36 : vector<8x256xi1>, vector<8x256xi32>
    %cst_7 = arith.constant dense<2147483647> : vector<256xi32>
    %38 = vector.multi_reduction <minsi>, %37, %cst_7 [0] : vector<8x256xi32> to vector<256xi32>
    %39 = vector.shape_cast %38 : vector<256xi32> to vector<1x256xi32>
    %c7_i32 = arith.constant 7 : i32
    %40 = vector.broadcast %c7_i32 : i32 to vector<1x256xi32>
    %41 = arith.minsi %39, %40 : vector<1x256xi32>
    %42 = vector.broadcast %41 : vector<1x256xi32> to vector<8x256xi32>
    %43 = arith.cmpi eq, %33, %42 : vector<8x256xi32>
    %44 = arith.extui %43 : vector<8x256xi1> to vector<8x256xi32>
    %45 = arith.sitofp %44 : vector<8x256xi32> to vector<8x256xf32>
    %46 = vector.extract_strided_slice %0 {offsets = [0, 0], sizes = [8, 1], strides = [1, 1]} : vector<8x4xf32> to vector<8x1xf32>
    %47 = vector.broadcast %46 : vector<8x1xf32> to vector<8x256xf32>
    %48 = arith.mulf %45, %47 : vector<8x256xf32>
    %cst_8 = arith.constant dense<0.000000e+00> : vector<256xf32>
    %49 = vector.multi_reduction <add>, %48, %cst_8 [0] : vector<8x256xf32> to vector<256xf32>
    %50 = vector.shape_cast %49 : vector<256xf32> to vector<1x256xf32>
    %51 = vector.extract_strided_slice %0 {offsets = [0, 1], sizes = [8, 1], strides = [1, 1]} : vector<8x4xf32> to vector<8x1xf32>
    %52 = vector.broadcast %51 : vector<8x1xf32> to vector<8x256xf32>
    %53 = arith.mulf %45, %52 : vector<8x256xf32>
    %cst_9 = arith.constant dense<0.000000e+00> : vector<256xf32>
    %54 = vector.multi_reduction <add>, %53, %cst_9 [0] : vector<8x256xf32> to vector<256xf32>
    %55 = vector.shape_cast %54 : vector<256xf32> to vector<1x256xf32>
    %56 = vector.extract_strided_slice %0 {offsets = [0, 2], sizes = [8, 1], strides = [1, 1]} : vector<8x4xf32> to vector<8x1xf32>
    %57 = vector.broadcast %56 : vector<8x1xf32> to vector<8x256xf32>
    %58 = arith.mulf %45, %57 : vector<8x256xf32>
    %cst_10 = arith.constant dense<0.000000e+00> : vector<256xf32>
    %59 = vector.multi_reduction <add>, %58, %cst_10 [0] : vector<8x256xf32> to vector<256xf32>
    %60 = vector.shape_cast %59 : vector<256xf32> to vector<1x256xf32>
    %61 = vector.extract_strided_slice %0 {offsets = [0, 3], sizes = [8, 1], strides = [1, 1]} : vector<8x4xf32> to vector<8x1xf32>
    %62 = vector.broadcast %61 : vector<8x1xf32> to vector<8x256xf32>
    %63 = arith.mulf %45, %62 : vector<8x256xf32>
    %cst_11 = arith.constant dense<0.000000e+00> : vector<256xf32>
    %64 = vector.multi_reduction <add>, %63, %cst_11 [0] : vector<8x256xf32> to vector<256xf32>
    %65 = vector.shape_cast %64 : vector<256xf32> to vector<1x256xf32>
    %66 = tpu.concatenate %50, %55, %60, %65 in 0 : vector<1x256xf32>, vector<1x256xf32>, vector<1x256xf32>, vector<1x256xf32> -> vector<4x256xf32>
    %c0_12 = arith.constant 0 : index
    %c0_13 = arith.constant 0 : index
    %c0_14 = arith.constant 0 : index
    %67 = vector.load %arg6[%c0_12, %c0_13, %c0_14] : memref<1x4x256xf32, #tpu.memory_space<vmem>>, vector<1x4x256xf32>
    %68 = vector.shape_cast %67 : vector<1x4x256xf32> to vector<4x256xf32>
    %69 = vector.shape_cast %66 : vector<4x256xf32> to vector<1x4x256xf32>
    tpu.vector_store %arg6[%c0_12, %c0_13, %c0_14], %69 {strides = array<i32>} : memref<1x4x256xf32, #tpu.memory_space<vmem>>, vector<1x4x256xf32>,
    %c0_15 = arith.constant 0 : index
    %c0_16 = arith.constant 0 : index
    %c0_17 = arith.constant 0 : index
    %70 = vector.load %arg7[%c0_15, %c0_16, %c0_17] : memref<1x1x256xi32, #tpu.memory_space<vmem>>, vector<1x1x256xi32>
    %71 = vector.shape_cast %70 : vector<1x1x256xi32> to vector<1x256xi32>
    %72 = vector.shape_cast %41 : vector<1x256xi32> to vector<1x1x256xi32>
    tpu.vector_store %arg7[%c0_15, %c0_16, %c0_17], %72 {strides = array<i32>} : memref<1x1x256xi32, #tpu.memory_space<vmem>>, vector<1x1x256xi32>,
    %c0_18 = arith.constant 0 : index
    %c0_19 = arith.constant 0 : index
    %c0_20 = arith.constant 0 : index
    %73 = vector.load %arg3[%c0_18, %c0_19, %c0_20] : memref<1x4x256xf32, #tpu.memory_space<vmem>>, vector<1x4x256xf32>
    %74 = vector.shape_cast %73 : vector<1x4x256xf32> to vector<4x256xf32>
    %75 = vector.extract_strided_slice %0 {offsets = [0, 0], sizes = [8, 1], strides = [1, 1]} : vector<8x4xf32> to vector<8x1xf32>
    %76 = vector.extract_strided_slice %74 {offsets = [0, 0], sizes = [1, 256], strides = [1, 1]} : vector<4x256xf32> to vector<1x256xf32>
    %77 = vector.broadcast %75 : vector<8x1xf32> to vector<8x256xf32>
    %78 = vector.broadcast %76 : vector<1x256xf32> to vector<8x256xf32>
    %79 = arith.mulf %77, %78 : vector<8x256xf32>
    %80 = vector.extract_strided_slice %0 {offsets = [0, 1], sizes = [8, 1], strides = [1, 1]} : vector<8x4xf32> to vector<8x1xf32>
    %81 = vector.extract_strided_slice %74 {offsets = [1, 0], sizes = [1, 256], strides = [1, 1]} : vector<4x256xf32> to vector<1x256xf32>
    %82 = vector.broadcast %80 : vector<8x1xf32> to vector<8x256xf32>
    %83 = vector.broadcast %81 : vector<1x256xf32> to vector<8x256xf32>
    %84 = arith.mulf %82, %83 : vector<8x256xf32>
    %85 = arith.addf %79, %84 : vector<8x256xf32>
    %86 = vector.extract_strided_slice %0 {offsets = [0, 2], sizes = [8, 1], strides = [1, 1]} : vector<8x4xf32> to vector<8x1xf32>
    %87 = vector.extract_strided_slice %74 {offsets = [2, 0], sizes = [1, 256], strides = [1, 1]} : vector<4x256xf32> to vector<1x256xf32>
    %88 = vector.broadcast %86 : vector<8x1xf32> to vector<8x256xf32>
    %89 = vector.broadcast %87 : vector<1x256xf32> to vector<8x256xf32>
    %90 = arith.mulf %88, %89 : vector<8x256xf32>
    %91 = arith.addf %85, %90 : vector<8x256xf32>
    %92 = vector.extract_strided_slice %0 {offsets = [0, 3], sizes = [8, 1], strides = [1, 1]} : vector<8x4xf32> to vector<8x1xf32>
    %93 = vector.extract_strided_slice %74 {offsets = [3, 0], sizes = [1, 256], strides = [1, 1]} : vector<4x256xf32> to vector<1x256xf32>
    %94 = vector.broadcast %92 : vector<8x1xf32> to vector<8x256xf32>
    %95 = vector.broadcast %93 : vector<1x256xf32> to vector<8x256xf32>
    %96 = arith.mulf %94, %95 : vector<8x256xf32>
    %97 = arith.addf %91, %96 : vector<8x256xf32>
    %cst_21 = arith.constant 2.000000e+00 : f32
    %98 = vector.broadcast %cst_21 : f32 to vector<8x256xf32>
    %99 = arith.mulf %98, %97 : vector<8x256xf32>
    %100 = vector.broadcast %1 : vector<8x1xf32> to vector<8x256xf32>
    %101 = arith.subf %100, %99 : vector<8x256xf32>
    %cst_22 = arith.constant dense<0x7F800000> : vector<256xf32>
    %102 = vector.multi_reduction <minimumf>, %101, %cst_22 [0] : vector<8x256xf32> to vector<256xf32>
    %103 = vector.shape_cast %102 : vector<256xf32> to vector<1x256xf32>
    %104 = tpu.iota {dimensions = array<i32: 0>} : vector<8x256xi32>
    %105 = vector.broadcast %103 : vector<1x256xf32> to vector<8x256xf32>
    %106 = arith.cmpf oeq, %101, %105 : vector<8x256xf32>
    %c8_i32_23 = arith.constant 8 : i32
    %107 = vector.broadcast %c8_i32_23 : i32 to vector<8x256xi32>
    %108 = arith.select %106, %104, %107 : vector<8x256xi1>, vector<8x256xi32>
    %cst_24 = arith.constant dense<2147483647> : vector<256xi32>
    %109 = vector.multi_reduction <minsi>, %108, %cst_24 [0] : vector<8x256xi32> to vector<256xi32>
    %110 = vector.shape_cast %109 : vector<256xi32> to vector<1x256xi32>
    %c7_i32_25 = arith.constant 7 : i32
    %111 = vector.broadcast %c7_i32_25 : i32 to vector<1x256xi32>
    %112 = arith.minsi %110, %111 : vector<1x256xi32>
    %113 = vector.broadcast %112 : vector<1x256xi32> to vector<8x256xi32>
    %114 = arith.cmpi eq, %104, %113 : vector<8x256xi32>
    %115 = arith.extui %114 : vector<8x256xi1> to vector<8x256xi32>
    %116 = arith.sitofp %115 : vector<8x256xi32> to vector<8x256xf32>
    %117 = vector.extract_strided_slice %0 {offsets = [0, 0], sizes = [8, 1], strides = [1, 1]} : vector<8x4xf32> to vector<8x1xf32>
    %118 = vector.broadcast %117 : vector<8x1xf32> to vector<8x256xf32>
    %119 = arith.mulf %116, %118 : vector<8x256xf32>
    %cst_26 = arith.constant dense<0.000000e+00> : vector<256xf32>
    %120 = vector.multi_reduction <add>, %119, %cst_26 [0] : vector<8x256xf32> to vector<256xf32>
    %121 = vector.shape_cast %120 : vector<256xf32> to vector<1x256xf32>
    %122 = vector.extract_strided_slice %0 {offsets = [0, 1], sizes = [8, 1], strides = [1, 1]} : vector<8x4xf32> to vector<8x1xf32>
    %123 = vector.broadcast %122 : vector<8x1xf32> to vector<8x256xf32>
    %124 = arith.mulf %116, %123 : vector<8x256xf32>
    %cst_27 = arith.constant dense<0.000000e+00> : vector<256xf32>
    %125 = vector.multi_reduction <add>, %124, %cst_27 [0] : vector<8x256xf32> to vector<256xf32>
    %126 = vector.shape_cast %125 : vector<256xf32> to vector<1x256xf32>
    %127 = vector.extract_strided_slice %0 {offsets = [0, 2], sizes = [8, 1], strides = [1, 1]} : vector<8x4xf32> to vector<8x1xf32>
    %128 = vector.broadcast %127 : vector<8x1xf32> to vector<8x256xf32>
    %129 = arith.mulf %116, %128 : vector<8x256xf32>
    %cst_28 = arith.constant dense<0.000000e+00> : vector<256xf32>
    %130 = vector.multi_reduction <add>, %129, %cst_28 [0] : vector<8x256xf32> to vector<256xf32>
    %131 = vector.shape_cast %130 : vector<256xf32> to vector<1x256xf32>
    %132 = vector.extract_strided_slice %0 {offsets = [0, 3], sizes = [8, 1], strides = [1, 1]} : vector<8x4xf32> to vector<8x1xf32>
    %133 = vector.broadcast %132 : vector<8x1xf32> to vector<8x256xf32>
    %134 = arith.mulf %116, %133 : vector<8x256xf32>
    %cst_29 = arith.constant dense<0.000000e+00> : vector<256xf32>
    %135 = vector.multi_reduction <add>, %134, %cst_29 [0] : vector<8x256xf32> to vector<256xf32>
    %136 = vector.shape_cast %135 : vector<256xf32> to vector<1x256xf32>
    %137 = tpu.concatenate %121, %126, %131, %136 in 0 : vector<1x256xf32>, vector<1x256xf32>, vector<1x256xf32>, vector<1x256xf32> -> vector<4x256xf32>
    %c0_30 = arith.constant 0 : index
    %c0_31 = arith.constant 0 : index
    %c0_32 = arith.constant 0 : index
    %138 = vector.load %arg8[%c0_30, %c0_31, %c0_32] : memref<1x4x256xf32, #tpu.memory_space<vmem>>, vector<1x4x256xf32>
    %139 = vector.shape_cast %138 : vector<1x4x256xf32> to vector<4x256xf32>
    %140 = vector.shape_cast %137 : vector<4x256xf32> to vector<1x4x256xf32>
    tpu.vector_store %arg8[%c0_30, %c0_31, %c0_32], %140 {strides = array<i32>} : memref<1x4x256xf32, #tpu.memory_space<vmem>>, vector<1x4x256xf32>,
    %c0_33 = arith.constant 0 : index
    %c0_34 = arith.constant 0 : index
    %c0_35 = arith.constant 0 : index
    %141 = vector.load %arg9[%c0_33, %c0_34, %c0_35] : memref<1x1x256xi32, #tpu.memory_space<vmem>>, vector<1x1x256xi32>
    %142 = vector.shape_cast %141 : vector<1x1x256xi32> to vector<1x256xi32>
    %143 = vector.shape_cast %112 : vector<1x256xi32> to vector<1x1x256xi32>
    tpu.vector_store %arg9[%c0_33, %c0_34, %c0_35], %143 {strides = array<i32>} : memref<1x1x256xi32, #tpu.memory_space<vmem>>, vector<1x1x256xi32>,
    return
  }
  func.func @transform_0(%arg0: i32, %arg1: i32) -> (i32, i32, i32) {
    %c0_i32 = arith.constant 0 : i32
    %c0_i32_0 = arith.constant 0 : i32
    return %arg0, %c0_i32, %arg1 : i32, i32, i32
  }
  func.func @transform_1(%arg0: i32, %arg1: i32) -> (i32, i32, i32) {
    %c0_i32 = arith.constant 0 : i32
    %c0_i32_0 = arith.constant 0 : i32
    return %arg0, %c0_i32, %arg1 : i32, i32, i32
  }
  func.func @transform_2(%arg0: i32, %arg1: i32) -> (i32, i32) {
    %c0_i32 = arith.constant 0 : i32
    %c0_i32_0 = arith.constant 0 : i32
    %c0_i32_1 = arith.constant 0 : i32
    return %c0_i32, %c0_i32_0 : i32, i32
  }
  func.func @transform_3(%arg0: i32, %arg1: i32) -> (i32, i32) {
    %c0_i32 = arith.constant 0 : i32
    %c0_i32_0 = arith.constant 0 : i32
    %c0_i32_1 = arith.constant 0 : i32
    return %c0_i32, %c0_i32_0 : i32, i32
  }
  func.func @transform_4(%arg0: i32, %arg1: i32) -> (i32, i32, i32) {
    %c0_i32 = arith.constant 0 : i32
    %c0_i32_0 = arith.constant 0 : i32
    return %arg0, %c0_i32, %arg1 : i32, i32, i32
  }
  func.func @transform_5(%arg0: i32, %arg1: i32) -> (i32, i32, i32) {
    %c0_i32 = arith.constant 0 : i32
    %c0_i32_0 = arith.constant 0 : i32
    return %arg0, %c0_i32, %arg1 : i32, i32, i32
  }
  func.func @transform_6(%arg0: i32, %arg1: i32) -> (i32, i32, i32) {
    %c0_i32 = arith.constant 0 : i32
    %c0_i32_0 = arith.constant 0 : i32
    return %arg0, %c0_i32, %arg1 : i32, i32, i32
  }
  func.func @transform_7(%arg0: i32, %arg1: i32) -> (i32, i32, i32) {
    %c0_i32 = arith.constant 0 : i32
    %c0_i32_0 = arith.constant 0 : i32
    return %arg0, %c0_i32, %arg1 : i32, i32, i32
  }
}

</mosaic_0001>

<bundles_post_ra>
// kernel: squeeze.3
= control target key start
LH: loop header
LB: loop body
LE: loop exit
PB: predicated region body
PF: predicated region fallthrough
CT: control target
= control target key end

     0   :  { %s139_s0 = inlined_call_operand.vmem [shape: s32[2,256], index: 0, kind: input, shape index: {}]   ;;  %s140_s1 = inlined_call_operand.hbm [shape: s32[2,16,16], index: 1, kind: output, shape index: {}]  }
   0x1   :  { %v72_v0 = vld [vmem:[%s139_s0 + $0x2] sm:$0x3]  ;;  %v10_v1 = vld [vmem:[%s139_s0] sm:$0x3] }
   0x2   :  { %9 = vst [vmem:[#allocation2 + $0x8] sm:$0x3] %v72_v0  ;;  %11 = vst [vmem:[#allocation2] sm:$0x3] %v10_v1 }
   0x3   :  { %2 = vsyncpa [#allocation1], 0  ;;  %vm13_vm0 = vcmask 130048   ;;  %s103_s0 = smov 112   ;;  %s104_s10 = smov 80  }
   0x4   :  { %s105_s11 = smov 96   ;;  %s106_s12 = smov 64  }
   0x5   :  { %s107_s13 = smov 48   ;;  %s108_s14 = smov 32  }
   0x6   :  { %s109_s15 = smov 16   ;;  %s110_s16 = smov [#allocation0]  }
   0x7   :  { %s66_s17 = sshll.u32 %s110_s16, 4  ;;  %s67_s17 = int_to_ptr.vmem [resolvable:$true] %s66_s17 }
   0x8   :  { %s81_s18 = scalar_lea.vmem %s67_s17, 512  ;;  %p86_p1 = scmp.lt.s32.totalorder %s67_s17, %s67_s17 }
   0x9   :  { %v20_v2 = vld.sshfl [vmem:[#allocation2] sm:$0xff pattern:$0x99999180]   ;;  %p82_p0 = scmp.ne.s32.totalorder %s67_s17, %s81_s18  ;;  %p87_p2 = scmp.lt.s32.totalorder %s81_s18, %s81_s18 }
   0xa   :  { %v12_v3 = vld [vmem:[#allocation2] sm:$0x3]   ;;  %21 = vrot.lane.b32.xlu0 %v20_v2, %s103_s0  ;;  %33 = vrot.lane.b32.xlu1 %v20_v2, %s104_s10  ;;  %v16_v4 = vld [vmem:[#allocation2 + $0x8] sm:$0x3]  }
   0xb   :  { %14 = vst.msk [vmem:[#allocation0] ss:$16 sm:$0x3] %vm13_vm0, %v12_v3   ;;  %19 = vst.msk [vmem:[#allocation0 + $0x8] ss:$16 sm:$0x3] %vm13_vm0, %v16_v4   ;;  %p88_p3 = por %p87_p2, %p86_p1 }
   0xd   :  { %p89_p4 = pnand %p88_p3, %p82_p0 }
   0xe   :  { %27 = vrot.lane.b32.xlu0 %v20_v2, %s105_s11  ;;  %39 = vrot.lane.b32.xlu1 %v20_v2, %s106_s12 }
  0x12   :  { %45 = vrot.lane.b32.xlu0 %v20_v2, %s107_s13  ;;  %51 = vrot.lane.b32.xlu1 %v20_v2, %s108_s14 }
  0x16   :  { %57 = vrot.lane.b32.xlu0 %v20_v2, %s109_s15 }
  0x7c   :  { %v22_v5 = vpop.permute.xlu0 %21   ;;  %v34_v6 = vpop.permute.xlu1 %33  }
  0x7d   :  { %25 = vst.msk [vmem:[#allocation0 + $0x1] ss:$8 sm:$0xf] %vm13_vm0, %v22_v5   ;;  %37 = vst.msk [vmem:[#allocation0 + $0x3] ss:$8 sm:$0xf] %vm13_vm0, %v34_v6  }
  0x80   :  { %v28_v7 = vpop.permute.xlu0 %27   ;;  %v40_v8 = vpop.permute.xlu1 %39  }
  0x81   :  { %31 = vst.msk [vmem:[#allocation0 + $0x2] ss:$8 sm:$0xf] %vm13_vm0, %v28_v7   ;;  %43 = vst.msk [vmem:[#allocation0 + $0x4] ss:$8 sm:$0xf] %vm13_vm0, %v40_v8  }
  0x84   :  { %v46_v9 = vpop.permute.xlu0 %45   ;;  %v52_v10 = vpop.permute.xlu1 %51  }
  0x85   :  { %49 = vst.msk [vmem:[#allocation0 + $0x5] ss:$8 sm:$0xf] %vm13_vm0, %v46_v9   ;;  %55 = vst.msk [vmem:[#allocation0 + $0x6] ss:$8 sm:$0xf] %vm13_vm0, %v52_v10  }
  0x88   :  { %v58_v11 = vpop.permute.xlu0 %57  }
  0x89   :  { %61 = vst.msk [vmem:[#allocation0 + $0x7] ss:$8 sm:$0xf] %vm13_vm0, %v58_v11  }
  0x8a   :  { %92 = shalt.err (!%p89_p4)
}
  0x8b   :  { %69 = dma.vmem_to_hbm [thread:$0]  %s67_s17, 512, %s140_s1, [#allocation1]  }
  0x8c   :  { %101 = dma.done.wait [#allocation1], 512  }
  0x8d   :  { %102 = vsyncadd [#allocation1], 4294966784 }
  0x8e   :  { %71 = vsyncpa [#allocation1], 1 }

// kernel: _vq_forward.1
= control target key start
LH: loop header
LB: loop body
LE: loop exit
PB: predicated region body
PF: predicated region fallthrough
CT: control target
= control target key end

     0   :  { %s1265_s24 = smov 0   ;;  %s1267_s25 = smov 0   ;;  %s1443_s0 = inlined_call_operand.vmem [shape: f32[2,4,256], index: 0, kind: input, shape index: {}]   ;;  %s1444_s1 = inlined_call_operand.vmem [shape: f32[2,4,256], index: 1, kind: input, shape index: {}]   ;;  %s1445_s2 = inlined_call_operand.vmem [shape: f32[8,4], index: 2, kind: input, shape index: {}]   ;;  %s1446_s3 = inlined_call_operand.vmem [shape: f32[8,1], index: 3, kind: input, shape index: {}]   ;;  %s1447_s4 = inlined_call_operand.vmem [shape: f32[2,4,256], index: 4, kind: output, shape index: {0}]   ;;  %s1448_s5 = inlined_call_operand.vmem [shape: s32[2,1,256], index: 5, kind: output, shape index: {1}]   ;;  %s1449_s6 = inlined_call_operand.vmem [shape: f32[2,4,256], index: 6, kind: output, shape index: {2}]   ;;  %s1450_s7 = inlined_call_operand.vmem [shape: s32[2,1,256], index: 7, kind: output, shape index: {3}]  }
   0x1   :  { %s1269_s26 = smov 0  }
   0x2 LB: > { %s30_s27 = sadd.s32 1, %s1213_s25  ;;  %p1138_p0 = scmp.ge.s32.totalorder %s1217_s26, 1  ;;  %s1217_s26 = sphi %s1269_s26, %s18_s26   ;;  %s1213_s25 = sphi %s1267_s25, %s1454_s25   ;;  %s1209_s24 = sphi %s1265_s24, %s1453_s24  }
   0x3   : > { %p32_p1 = scmp.ge.s32.totalorder %s30_s27, 2  ;;  %p288_p2 = scmp.lt.s32.totalorder %s1217_s26, 3 }
   0x5   : > { %s1456_s27 = smov (%p32_p1, %s30_s27), 0  ;;  %p289_p3 = pnand %p1138_p0, %p288_p2 }
   0x6   : > { %p363_p4 = scmp.lt.s32.totalorder (!%p289_p3), %s1209_s24, 1 }
   0x7   : > { %292 = sbr.rel (%p289_p3) target bundleno = 222 (0xde), region = 36 }
   0xc   : > { %v420_v0 = vld [vmem:[%s1445_s2] sm:$0xff]  ;;  %v1219_v1 = vmov 0   ;;  %v1220_v2 = vmov 2   ;;  %v1221_v3 = vmov 1   ;;  %v1222_v4 = vmov 3   ;;  %s1458_s24 = smov (!%p363_p4, %s1209_s24), 1 }
   0xd   : > { %1189 = vset.pattern.permute.xlu0 %v1219_v1  ;;  %1191 = vset.pattern.permute.xlu1 %v1220_v2  ;;  %v421_v5 = vld [vmem:[%s1446_s3] sm:$0xff]  ;;  %v429_v6 = vlaneseq  ;;  %s1292_s9 = sshll.u32 %s1458_s24, 3  ;;  %s1145_s16 = sshll.u32 %s1458_s24, 1 }
   0xe   : > { %425 = vperm.xlu0 %1189, %v420_v0   ;;  %476 = vperm.xlu1 %1191, %v420_v0   ;;  %s370_s12 = scalar_lea.vmem %s1443_s0, %s1292_s9  ;;  %s380_s15 = scalar_lea.vmem %s1444_s1, %s1292_s9 }
   0xf   : > { %v1295_v7 = vshrl.u32 %v429_v6, 7  ;;  %v422_v14 = vld [vmem:[%s370_s12] sm:$0xff]  ;;  %s399_s19 = scalar_lea.vmem %s1448_s5, %s1145_s16  ;;  %s390_s22 = scalar_lea.vmem %s1447_s4, %s1292_s9 }
  0x10   : > { %v672_v15 = vld [vmem:[%s380_s15] sm:$0xff]  ;;  %s409_s29 = scalar_lea.vmem %s1449_s6, %s1292_s9  ;;  %s418_s10 = scalar_lea.vmem %s1450_s7, %s1145_s16 }
  0x11   : > { %v431_v8 = vsub.s32 0, %v1295_v7  ;;  %v435_v9 = vsub.s32 4, %v1295_v7  ;;  %v481_v10 = vsub.s32 2, %v1295_v7  ;;  %v485_v11 = vsub.s32 6, %v1295_v7 }
  0x12   : > { %1190 = vset.pattern.permute.xlu0 %v1221_v3  ;;  %1192 = vset.pattern.permute.xlu1 %v1222_v4  ;;  %v455_v12 = vsub.s32 1, %v1295_v7  ;;  %v459_v13 = vsub.s32 5, %v1295_v7  ;;  %v507_v16 = vsub.s32 3, %v1295_v7  ;;  %v511_v17 = vsub.s32 7, %v1295_v7 }
  0x13   : > { %450 = vperm.xlu0 %1190, %v420_v0   ;;  %502 = vperm.xlu1 %1192, %v420_v0   ;;  %v432_v18 = vrot.slane %v422_v14, %v431_v8  ;;  %v436_v19 = vrot.slane %v422_v14, %v435_v9  ;;  %v482_v20 = vrot.slane %v422_v14, %v481_v10 }
  0x14   : > { %v486_v21 = vrot.slane %v422_v14, %v485_v11  ;;  %v456_v22 = vrot.slane %v422_v14, %v455_v12  ;;  %v460_v23 = vrot.slane %v422_v14, %v459_v13  ;;  %v677_v24 = vrot.slane %v672_v15, %v431_v8 }
  0x15   : > { %v681_v25 = vrot.slane %v672_v15, %v435_v9  ;;  %v697_v26 = vrot.slane %v672_v15, %v455_v12  ;;  %v701_v27 = vrot.slane %v672_v15, %v459_v13  ;;  %v719_v28 = vrot.slane %v672_v15, %v481_v10 }
  0x16   : > { %v723_v29 = vrot.slane %v672_v15, %v485_v11  ;;  %v508_v32 = vrot.slane %v422_v14, %v507_v16  ;;  %v512_v33 = vrot.slane %v422_v14, %v511_v17  ;;  %v741_v34 = vrot.slane %v672_v15, %v507_v16 }
  0x17   : > { %1193 = vset.pattern.permute.xlu1 %v1219_v1  ;;  %1194 = vset.pattern.permute.xlu0 %v1219_v1  ;;  %v745_v35 = vrot.slane %v672_v15, %v511_v17  ;;  %v442_v36 = vrot.slane %v432_v18, %v431_v8  ;;  %v446_v37 = vrot.slane %v436_v19, %v431_v8 }
  0x18   : > { %531 = vperm.xlu1 %1193, %v421_v5   ;;  %v492_v38 = vrot.slane %v482_v20, %v481_v10  ;;  %v496_v39 = vrot.slane %v486_v21, %v481_v10  ;;  %v466_v40 = vrot.slane %v456_v22, %v455_v12  ;;  %v470_v41 = vrot.slane %v460_v23, %v455_v12 }
  0x19   : > { %v687_v42 = vrot.slane %v677_v24, %v431_v8  ;;  %v691_v43 = vrot.slane %v681_v25, %v431_v8  ;;  %v707_v44 = vrot.slane %v697_v26, %v455_v12  ;;  %v711_v45 = vrot.slane %v701_v27, %v455_v12 }
  0x1a   : > { %v729_v46 = vrot.slane %v719_v28, %v481_v10  ;;  %v733_v47 = vrot.slane %v723_v29, %v481_v10  ;;  %v518_v48 = vrot.slane %v508_v32, %v507_v16  ;;  %v522_v49 = vrot.slane %v512_v33, %v507_v16 }
  0x1b   : > { %v751_v50 = vrot.slane %v741_v34, %v507_v16  ;;  %v755_v51 = vrot.slane %v745_v35, %v507_v16 }
  0x89   : > { %v1313_v30 = vpop.permute.xlu0 %425  ;;  %v1315_v31 = vpop.permute.xlu1 %476 }
  0x8a   : > { %v447_v54 = vmul.f32 %v442_v36, %v1313_v30  ;;  %v448_v55 = vmul.f32 %v446_v37, %v1313_v30  ;;  %v497_v56 = vmul.f32 %v492_v38, %v1315_v31  ;;  %v498_v57 = vmul.f32 %v496_v39, %v1315_v31 }
  0x8b   : > { %v692_v60 = vmul.f32 %v687_v42, %v1313_v30  ;;  %v693_v61 = vmul.f32 %v691_v43, %v1313_v30  ;;  %v734_v0 = vmul.f32 %v729_v46, %v1315_v31  ;;  %v735_v1 = vmul.f32 %v733_v47, %v1315_v31 }
  0x8e   : > { %v1317_v52 = vpop.permute.xlu0 %450  ;;  %v1319_v53 = vpop.permute.xlu1 %502 }
  0x8f   : > { %v471_v58 = vmul.f32 %v466_v40, %v1317_v52  ;;  %v472_v59 = vmul.f32 %v470_v41, %v1317_v52  ;;  %v712_v62 = vmul.f32 %v707_v44, %v1317_v52  ;;  %v713_v63 = vmul.f32 %v711_v45, %v1317_v52 }
  0x90   : > { %v523_v4 = vmul.f32 %v518_v48, %v1319_v53  ;;  %v524_v5 = vmul.f32 %v522_v49, %v1319_v53  ;;  %v756_v10 = vmul.f32 %v751_v50, %v1319_v53  ;;  %v757_v11 = vmul.f32 %v755_v51, %v1319_v53 }
  0x91   : > { %v473_v2 = vadd.f32 %v471_v58, %v447_v54  ;;  %v474_v3 = vadd.f32 %v472_v59, %v448_v55  ;;  %v714_v8 = vadd.f32 %v712_v62, %v692_v60  ;;  %v715_v9 = vadd.f32 %v713_v63, %v693_v61 }
  0x93   : > { %v499_v12 = vadd.f32 %v497_v56, %v473_v2  ;;  %v500_v13 = vadd.f32 %v498_v57, %v474_v3  ;;  %v736_v14 = vadd.f32 %v734_v0, %v714_v8  ;;  %v737_v15 = vadd.f32 %v735_v1, %v715_v9  ;;  %v532_v18 = vpop.permute.xlu1 %531 }
  0x95   : > { %v525_v16 = vadd.f32 %v523_v4, %v499_v12  ;;  %v526_v17 = vadd.f32 %v524_v5, %v500_v13  ;;  %v758_v19 = vadd.f32 %v756_v10, %v736_v14  ;;  %v759_v20 = vadd.f32 %v757_v11, %v737_v15 }
  0x96   : > { %v1223_v11 = vmov 1966171168  }
  0x97   : > { %v527_v21 = vmul.f32 2.0, %v525_v16  ;;  %v528_v22 = vmul.f32 2.0, %v526_v17  ;;  %v760_v23 = vmul.f32 2.0, %v758_v19  ;;  %v761_v24 = vmul.f32 2.0, %v759_v20 }
  0x98   : > { %v654_v12 = vunpack.c.l.s4 %v1223_v11 }
  0x99   : > { %v534_v25 = vsub.f32 %v532_v18, %v527_v21  ;;  %v535_v26 = vsub.f32 %v532_v18, %v528_v22  ;;  %v762_v27 = vsub.f32 %v532_v18, %v760_v23  ;;  %v763_v28 = vsub.f32 %v532_v18, %v761_v24 }
  0x9a   : > { %v655_v21 = vunpack.c.0.s8 %v654_v12 }
  0x9b   : > { %v536_v29 = vrot.slane %v534_v25, 4  ;;  %v542_v32 = vrot.slane %v535_v26, 4  ;;  %v764_v33 = vrot.slane %v762_v27, 4  ;;  %v770_v34 = vrot.slane %v763_v28, 4 }
  0x9d   : > { %v537_v35 = vmin.f32 %v534_v25, %v536_v29  ;;  %v543_v36 = vmin.f32 %v535_v26, %v542_v32  ;;  %v765_v37 = vmin.f32 %v762_v27, %v764_v33  ;;  %v771_v38 = vmin.f32 %v763_v28, %v770_v34 }
  0x9e   : > { %v1224_v32 = vmov 0.0  }
  0x9f   : > { %v538_v39 = vrot.slane %v537_v35, 2  ;;  %v544_v40 = vrot.slane %v543_v36, 2  ;;  %v766_v41 = vrot.slane %v765_v37, 2  ;;  %v772_v42 = vrot.slane %v771_v38, 2 }
  0xa1   : > { %v539_v43 = vmin.f32 %v537_v35, %v538_v39  ;;  %v545_v44 = vmin.f32 %v543_v36, %v544_v40  ;;  %v767_v45 = vmin.f32 %v765_v37, %v766_v41  ;;  %v773_v46 = vmin.f32 %v771_v38, %v772_v42 }
  0xa3   : > { %v540_v47 = vrot.slane %v539_v43, 1  ;;  %v546_v48 = vrot.slane %v545_v44, 1  ;;  %v768_v49 = vrot.slane %v767_v45, 1  ;;  %v774_v50 = vrot.slane %v773_v46, 1 }
  0xa5   : > { %v541_v51 = vmin.f32 %v539_v43, %v540_v47  ;;  %v547_v54 = vmin.f32 %v545_v44, %v546_v48  ;;  %v769_v55 = vmin.f32 %v767_v45, %v768_v49  ;;  %v775_v56 = vmin.f32 %v773_v46, %v774_v50 }
  0xa7   : > { %vm550_vm0 = vcmp.eq.f32.partialorder %v534_v25, %v541_v51  ;;  %vm551_vm1 = vcmp.eq.f32.partialorder %v535_v26, %v547_v54  ;;  %vm776_vm2 = vcmp.eq.f32.partialorder %v762_v27, %v769_v55  ;;  %vm777_vm3 = vcmp.eq.f32.partialorder %v763_v28, %v775_v56 }
  0xa8   : > { %v552_v57 = vsel %vm550_vm0, %v1295_v7, 8  ;;  %v553_v58 = vsel %vm551_vm1, %v1295_v7, 8  ;;  %v778_v61 = vsel %vm776_vm2, %v1295_v7, 8  ;;  %v779_v62 = vsel %vm777_vm3, %v1295_v7, 8 }
  0xa9   : > { %v554_v59 = vrot.slane %v552_v57, 4  ;;  %v563_v60 = vrot.slane %v553_v58, 4  ;;  %v780_v63 = vrot.slane %v778_v61, 4  ;;  %v789_v0 = vrot.slane %v779_v62, 4 }
  0xaa   : > { %v1346_v28 = vsub.s32 %v655_v21, %v1295_v7 }
  0xab   : > { %vm555_vm4 = vcmp.lt.s32.totalorder %v552_v57, %v554_v59  ;;  %vm564_vm5 = vcmp.lt.s32.totalorder %v553_v58, %v563_v60  ;;  %vm781_vm6 = vcmp.lt.s32.totalorder %v778_v61, %v780_v63  ;;  %vm790_vm7 = vcmp.lt.s32.totalorder %v779_v62, %v789_v0 }
  0xac   : > { %v556_v1 = vsel %vm555_vm4, %v552_v57, %v554_v59  ;;  %v565_v2 = vsel %vm564_vm5, %v553_v58, %v563_v60  ;;  %v782_v5 = vsel %vm781_vm6, %v778_v61, %v780_v63  ;;  %v791_v8 = vsel %vm790_vm7, %v779_v62, %v789_v0 }
  0xad   : > { %v557_v3 = vrot.slane %v556_v1, 2  ;;  %v566_v4 = vrot.slane %v565_v2, 2  ;;  %v783_v9 = vrot.slane %v782_v5, 2  ;;  %v792_v10 = vrot.slane %v791_v8, 2 }
  0xae   : > { %vm638_vm6 = vcmask 1040384   ;;  %vm641_vm7 = vcmask 1041408  }
  0xaf   : > { %vm558_vm8 = vcmp.lt.s32.totalorder %v556_v1, %v557_v3  ;;  %vm567_vm9 = vcmp.lt.s32.totalorder %v565_v2, %v566_v4  ;;  %vm784_vm10 = vcmp.lt.s32.totalorder %v782_v5, %v783_v9  ;;  %vm793_vm11 = vcmp.lt.s32.totalorder %v791_v8, %v792_v10 }
  0xb0   : > { %v559_v13 = vsel %vm558_vm8, %v556_v1, %v557_v3  ;;  %v568_v14 = vsel %vm567_vm9, %v565_v2, %v566_v4  ;;  %v785_v17 = vsel %vm784_vm10, %v782_v5, %v783_v9  ;;  %v794_v18 = vsel %vm793_vm11, %v791_v8, %v792_v10 }
  0xb1   : > { %v560_v15 = vrot.slane %v559_v13, 1  ;;  %v569_v16 = vrot.slane %v568_v14, 1  ;;  %v786_v19 = vrot.slane %v785_v17, 1  ;;  %v795_v20 = vrot.slane %v794_v18, 1 }
  0xb2   : > { %vm644_vm9 = vcmask 1042432   ;;  %vm1371_vm10 = vcmp.lt.s32.totalorder %v429_v6, 256 }
  0xb3   : > { %vm561_vm12 = vcmp.lt.s32.totalorder %v559_v13, %v560_v15  ;;  %vm570_vm13 = vcmp.lt.s32.totalorder %v568_v14, %v569_v16  ;;  %vm787_vm14 = vcmp.lt.s32.totalorder %v785_v17, %v786_v19  ;;  %vm796_vm15 = vcmp.lt.s32.totalorder %v794_v18, %v795_v20 }
  0xb4   : > { %v562_v22 = vsel %vm561_vm12, %v559_v13, %v560_v15  ;;  %v571_v23 = vsel %vm570_vm13, %v568_v14, %v569_v16  ;;  %v788_v24 = vsel %vm787_vm14, %v785_v17, %v786_v19  ;;  %v797_v25 = vsel %vm796_vm15, %v794_v18, %v795_v20 }
  0xb5   : > { %vm572_vm0 = vcmp.lt.s32.totalorder %v562_v22, 7  ;;  %vm574_vm1 = vcmp.lt.s32.totalorder %v571_v23, 7  ;;  %vm798_vm2 = vcmp.lt.s32.totalorder %v788_v24, 7  ;;  %vm800_vm3 = vcmp.lt.s32.totalorder %v797_v25, 7 }
  0xb6   : > { %v1341_v26 = vsel %vm572_vm0, %v562_v22, 7  ;;  %v1343_v27 = vsel %vm574_vm1, %v571_v23, 7  ;;  %v1356_v35 = vsel %vm798_vm2, %v788_v24, 7  ;;  %v1358_v36 = vsel %vm800_vm3, %v797_v25, 7 }
  0xb7   : > { %vm576_vm4 = vcmp.eq.s32.totalorder %v1295_v7, %v1341_v26  ;;  %vm577_vm5 = vcmp.eq.s32.totalorder %v1295_v7, %v1343_v27  ;;  %v652_v29 = vcombine.low %v1341_v26, %v1343_v27  ;;  %vm802_vm8 = vcmp.eq.s32.totalorder %v1295_v7, %v1356_v35 }
  0xb8   : > { %v1149_v33 = vsel %vm576_vm4, 1.0, %v1224_v32  ;;  %v1150_v34 = vsel %vm577_vm5, 1.0, %v1224_v32  ;;  %vm803_vm11 = vcmp.eq.s32.totalorder %v1295_v7, %v1358_v36 }
  0xb9   : > { %v582_v37 = vmul.f32 %v1149_v33, %v1313_v30  ;;  %v583_v38 = vmul.f32 %v1150_v34, %v1313_v30  ;;  %v596_v39 = vmul.f32 %v1149_v33, %v1317_v52  ;;  %v597_v40 = vmul.f32 %v1150_v34, %v1317_v52 }
  0xba   : > { %v610_v41 = vmul.f32 %v1149_v33, %v1315_v31  ;;  %v611_v42 = vmul.f32 %v1150_v34, %v1315_v31  ;;  %v624_v43 = vmul.f32 %v1149_v33, %v1319_v53  ;;  %v625_v44 = vmul.f32 %v1150_v34, %v1319_v53 }
  0xbb   : > { %v584_v45 = vrot.slane %v582_v37, 4  ;;  %v590_v46 = vrot.slane %v583_v38, 4  ;;  %v598_v47 = vrot.slane %v596_v39, 4  ;;  %v604_v48 = vrot.slane %v597_v40, 4 }
  0xbc   : > { %v612_v49 = vrot.slane %v610_v41, 4  ;;  %v618_v50 = vrot.slane %v611_v42, 4  ;;  %v626_v51 = vrot.slane %v624_v43, 4  ;;  %v632_v54 = vrot.slane %v625_v44, 4 }
  0xbd   : > { %v585_v55 = vadd.f32 %v584_v45, %v582_v37  ;;  %v591_v56 = vadd.f32 %v590_v46, %v583_v38  ;;  %v599_v57 = vadd.f32 %v598_v47, %v596_v39  ;;  %v605_v58 = vadd.f32 %v604_v48, %v597_v40 }
  0xbe   : > { %v613_v59 = vadd.f32 %v612_v49, %v610_v41  ;;  %v619_v60 = vadd.f32 %v618_v50, %v611_v42  ;;  %v627_v61 = vadd.f32 %v626_v51, %v624_v43  ;;  %v633_v62 = vadd.f32 %v632_v54, %v625_v44 }
  0xbf   : > { %v586_v63 = vrot.slane %v585_v55, 2  ;;  %v592_v0 = vrot.slane %v591_v56, 2  ;;  %v600_v1 = vrot.slane %v599_v57, 2  ;;  %v606_v2 = vrot.slane %v605_v58, 2 }
  0xc0   : > { %v614_v4 = vrot.slane %v613_v59, 2  ;;  %v620_v5 = vrot.slane %v619_v60, 2  ;;  %v628_v8 = vrot.slane %v627_v61, 2  ;;  %v634_v9 = vrot.slane %v633_v62, 2 }
  0xc1   : > { %v587_v10 = vadd.f32 %v586_v63, %v585_v55  ;;  %v593_v11 = vadd.f32 %v592_v0, %v591_v56  ;;  %v601_v12 = vadd.f32 %v600_v1, %v599_v57  ;;  %v607_v13 = vadd.f32 %v606_v2, %v605_v58 }
  0xc2   : > { %v615_v14 = vadd.f32 %v614_v4, %v613_v59  ;;  %v621_v15 = vadd.f32 %v620_v5, %v619_v60  ;;  %v629_v16 = vadd.f32 %v628_v8, %v627_v61  ;;  %v635_v17 = vadd.f32 %v634_v9, %v633_v62 }
  0xc3   : > { %v588_v18 = vrot.slane %v587_v10, 1  ;;  %v594_v19 = vrot.slane %v593_v11, 1  ;;  %v602_v20 = vrot.slane %v601_v12, 1  ;;  %v608_v6 = vrot.slane %v607_v13, 1 }
  0xc4   : > { %v616_v21 = vrot.slane %v615_v14, 1  ;;  %v622_v22 = vrot.slane %v621_v15, 1  ;;  %v630_v23 = vrot.slane %v629_v16, 1  ;;  %v636_v24 = vrot.slane %v635_v17, 1 }
  0xc5   : > { %v589_v25 = vadd.f32 %v588_v18, %v587_v10  ;;  %v595_v33 = vadd.f32 %v594_v19, %v593_v11  ;;  %v603_v34 = vadd.f32 %v602_v20, %v601_v12  ;;  %v609_v37 = vadd.f32 %v608_v6, %v607_v13 }
  0xc6   : > { %v617_v38 = vadd.f32 %v616_v21, %v615_v14  ;;  %v623_v39 = vadd.f32 %v622_v22, %v621_v15  ;;  %v631_v40 = vadd.f32 %v630_v23, %v629_v16  ;;  %v637_v41 = vadd.f32 %v636_v24, %v635_v17 }
  0xc7   : > { %v639_v42 = vsel %vm638_vm6, %v589_v25, %v603_v34  ;;  %v640_v43 = vsel %vm638_vm6, %v595_v33, %v609_v37  ;;  %v659_v44 = vrot.slane %v652_v29, %v1346_v28  ;;  %v1151_v47 = vsel %vm802_vm8, 1.0, %v1224_v32 }
  0xc8   : > { %v642_v45 = vsel %vm641_vm7, %v639_v42, %v617_v38  ;;  %v643_v46 = vsel %vm641_vm7, %v640_v43, %v623_v39  ;;  %v1152_v26 = vsel %vm803_vm11, 1.0, %v1224_v32  ;;  %v808_v49 = vmul.f32 %v1151_v47, %v1313_v30 }
  0xc9   : > { %v645_v27 = vsel %vm644_vm9, %v642_v45, %v631_v40  ;;  %v646_v29 = vsel %vm644_vm9, %v643_v46, %v637_v41  ;;  %v666_v48 = vrot.slane %v659_v44, %v1346_v28  ;;  %v809_v51 = vmul.f32 %v1152_v26, %v1313_v30 }
  0xca   : > { %v649_v50 = vcombine.low %v645_v27, %v646_v29  ;;  %v822_v7 = vmul.f32 %v1151_v47, %v1317_v52  ;;  %v823_v54 = vmul.f32 %v1152_v26, %v1317_v52  ;;  %v810_v32 = vrot.slane %v808_v49, 4 }
  0xcb   : > { %671 = vst.msk [vmem:[%s399_s19] sm:$0x3] %vm1371_vm10, %v666_v48  ;;  %v836_v55 = vmul.f32 %v1151_v47, %v1315_v31  ;;  %v837_v56 = vmul.f32 %v1152_v26, %v1315_v31  ;;  %v850_v57 = vmul.f32 %v1151_v47, %v1319_v53  ;;  %v816_v58 = vrot.slane %v809_v51, 4 }
  0xcc   : > { %651 = vst [vmem:[%s390_s22] sm:$0xff] %v649_v50  ;;  %v824_v59 = vrot.slane %v822_v7, 4  ;;  %v830_v60 = vrot.slane %v823_v54, 4  ;;  %v851_v30 = vmul.f32 %v1152_v26, %v1319_v53  ;;  %v811_v61 = vadd.f32 %v810_v32, %v808_v49 }
  0xcd   : > { %v838_v62 = vrot.slane %v836_v55, 4  ;;  %v844_v63 = vrot.slane %v837_v56, 4  ;;  %v852_v52 = vrot.slane %v850_v57, 4  ;;  %v817_v0 = vadd.f32 %v816_v58, %v809_v51 }
  0xce   : > { %v825_v1 = vadd.f32 %v824_v59, %v822_v7  ;;  %v831_v2 = vadd.f32 %v830_v60, %v823_v54  ;;  %v858_v4 = vrot.slane %v851_v30, 4  ;;  %v812_v5 = vrot.slane %v811_v61, 2 }
  0xcf   : > { %v839_v8 = vadd.f32 %v838_v62, %v836_v55  ;;  %v845_v9 = vadd.f32 %v844_v63, %v837_v56  ;;  %v853_v31 = vadd.f32 %v852_v52, %v850_v57  ;;  %v818_v10 = vrot.slane %v817_v0, 2 }
  0xd0   : > { %v826_v11 = vrot.slane %v825_v1, 2  ;;  %v832_v12 = vrot.slane %v831_v2, 2  ;;  %v859_v13 = vadd.f32 %v858_v4, %v851_v30  ;;  %v813_v14 = vadd.f32 %v812_v5, %v811_v61 }
  0xd1   : > { %v840_v15 = vrot.slane %v839_v8, 2  ;;  %v846_v16 = vrot.slane %v845_v9, 2  ;;  %v854_v53 = vrot.slane %v853_v31, 2  ;;  %v819_v17 = vadd.f32 %v818_v10, %v817_v0 }
  0xd2   : > { %v827_v18 = vadd.f32 %v826_v11, %v825_v1  ;;  %v833_v19 = vadd.f32 %v832_v12, %v831_v2  ;;  %v860_v20 = vrot.slane %v859_v13, 2  ;;  %v814_v6 = vrot.slane %v813_v14, 1 }
  0xd3   : > { %v841_v21 = vadd.f32 %v840_v15, %v839_v8  ;;  %v847_v22 = vadd.f32 %v846_v16, %v845_v9  ;;  %v855_v23 = vadd.f32 %v854_v53, %v853_v31  ;;  %v820_v24 = vrot.slane %v819_v17, 1 }
  0xd4   : > { %v828_v25 = vrot.slane %v827_v18, 1  ;;  %v834_v33 = vrot.slane %v833_v19, 1  ;;  %v861_v34 = vadd.f32 %v860_v20, %v859_v13  ;;  %v815_v37 = vadd.f32 %v814_v6, %v813_v14 }
  0xd5   : > { %v842_v38 = vrot.slane %v841_v21, 1  ;;  %v848_v39 = vrot.slane %v847_v22, 1  ;;  %v856_v40 = vrot.slane %v855_v23, 1  ;;  %v821_v41 = vadd.f32 %v820_v24, %v819_v17 }
  0xd6   : > { %v829_v42 = vadd.f32 %v828_v25, %v827_v18  ;;  %v835_v43 = vadd.f32 %v834_v33, %v833_v19  ;;  %v862_v44 = vrot.slane %v861_v34, 1  ;;  %v875_v47 = vcombine.low %v1356_v35, %v1358_v36 }
  0xd7   : > { %v843_v45 = vadd.f32 %v842_v38, %v841_v21  ;;  %v849_v46 = vadd.f32 %v848_v39, %v847_v22  ;;  %v857_v26 = vadd.f32 %v856_v40, %v855_v23 }
  0xd8   : > { %v863_v27 = vadd.f32 %v862_v44, %v861_v34  ;;  %v864_v29 = vsel %vm638_vm6, %v815_v37, %v829_v42  ;;  %v865_v48 = vsel %vm638_vm6, %v821_v41, %v835_v43  ;;  %v882_v51 = vrot.slane %v875_v47, %v1346_v28 }
  0xd9   : > { %v866_v49 = vsel %vm641_vm7, %v864_v29, %v843_v45  ;;  %v867_v50 = vsel %vm641_vm7, %v865_v48, %v849_v46 }
  0xda   : > { %v868_v35 = vsel %vm644_vm9, %v866_v49, %v857_v26  ;;  %v869_v36 = vsel %vm644_vm9, %v867_v50, %v863_v27  ;;  %v889_v54 = vrot.slane %v882_v51, %v1346_v28 }
  0xdb   : > { %v872_v7 = vcombine.low %v868_v35, %v869_v36 }
  0xdc   : > { %890 = vst.msk [vmem:[%s418_s10] sm:$0x3] %vm1371_vm10, %v889_v54 }
  0xdd   : > { %874 = vst [vmem:[%s409_s29] sm:$0xff] %v872_v7 }
  0xde PF: > { %s18_s26 = sadd.s32 1, %s1217_s26   ;;  %s1453_s24 = smov %s1213_s25 }
  0xdf   : > { %p15_p5 = scmp.ge.s32.totalorder %s18_s26, 4   ;;  %s1454_s25 = smov %s1456_s27 }
  0xe1   :  { %17 = sbr.rel (!%p15_p5) target bundleno = 2 (0x2), region = 105 }

</bundles_post_ra>
